<compile_context>
chip_gen: v7x
topology: tpu7x:2x2x1
jax: 0.10.0
libtpu: 0.0.40
codegen_flags: <defaults>
</compile_context>

<pallas_src>
import functools

import jax
import jax.numpy as jnp
from jax import lax
from jax.experimental import pallas as pl
from jax.experimental.pallas import tpu as pltpu

EPS = 1e-5  # nn.InstanceNorm1d default eps


# ----------------------------------------------------------------------------
# Fused encoder kernel: embedding + n_layers EncoderLayers, TB batch elements
# per grid step.
# ----------------------------------------------------------------------------
def _encoder_kernel(head_num, qkv_dim, n_layers,
                    data_ref, emb_w_ref, emb_b_ref,
                    wqkv_ref, wc_ref, w1_ref, w2_ref, vecs_ref,
                    o_ref, attn_ref):
    TB, S, _ = data_ref.shape
    E = emb_w_ref.shape[1]
    HD = head_num * qkv_dim
    F = w1_ref.shape[2]
    inv_s = 1.0 / float(S)

    # ---- Embedding on the VPU (contraction length 2 would waste the MXU) ----
    # Coordinates keep their (TB, S, 2) layout: the x/y columns are already
    # (TB, S, 1) sublane-major slabs, so the lane-broadcast against the
    # (1, E) weight rows is cheap (a lane-dense (2, S) input would need a
    # lane->sublane relayout before this broadcast).
    xy = data_ref[...]                                  # (TB, S, 2) f32
    w_emb = emb_w_ref[...]                              # (2, E)     f32
    act = (xy[:, :, 0:1] * w_emb[0:1, :]
           + xy[:, :, 1:2] * w_emb[1:2, :]
           + emb_b_ref[...])                            # (TB, S, E) f32

    def instance_norm(x, gamma, beta):
        # Single-pass stats (E[x], E[x^2]) in f32; clamp var against
        # cancellation before rsqrt.  Biased variance over the seq axis,
        # matching nn.InstanceNorm1d(track_running_stats=False).
        mean = jnp.sum(x, axis=1, keepdims=True) * inv_s
        mean_sq = jnp.sum(x * x, axis=1, keepdims=True) * inv_s
        var = jnp.maximum(mean_sq - mean * mean, 0.0)
        return (x - mean) * lax.rsqrt(var + EPS) * gamma + beta

    def layer_body(li, act):
        # Dynamic leading-dim reads of the stacked, VMEM-resident weights.
        wqkv = wqkv_ref[li]                             # (E, 3*HD) bf16
        wc = wc_ref[li]                                 # (HD, E)   bf16
        w1 = w1_ref[li]                                 # (E, F)    bf16
        w2 = w2_ref[li]                                 # (F, E)    bf16
        vecs = vecs_ref[li]                             # (7, VMAX) f32
        bc, g1, be1 = vecs[0:1, :E], vecs[1:2, :E], vecs[2:3, :E]
        b1 = vecs[3:4, :F]
        b2, g2, be2 = vecs[4:5, :E], vecs[5:6, :E], vecs[6:7, :E]

        x2 = act.reshape(TB * S, E)                     # (TB*S, E) f32

        # Fused QKV projection (1/sqrt(D) pre-folded into the Wq slice).
        qkv = jnp.dot(x2.astype(jnp.bfloat16), wqkv,
                      preferred_element_type=jnp.float32)       # (TB*S, 3HD)
        qkv = qkv.reshape(TB, S, 3 * HD).astype(jnp.bfloat16)
        q = qkv[:, :, 0:HD]
        k = qkv[:, :, HD:2 * HD]
        v = qkv[:, :, 2 * HD:3 * HD]

        # Multi-head attention, batched over the TB batch elements per head.
        # Each head's output goes straight into the (TB, S, HD) VMEM scratch
        # slab (no jnp.concatenate relayout, bounded live set).
        for h in range(head_num):
            lo = h * qkv_dim
            hi = lo + qkv_dim
            qh, kh, vh = q[:, :, lo:hi], k[:, :, lo:hi], v[:, :, lo:hi]
            s = jnp.einsum('bqd,bkd->bqk', qh, kh,
                           preferred_element_type=jnp.float32)  # (TB,S,S) f32
            s = s - jnp.max(s, axis=-1, keepdims=True)          # stable softmax
            e = jnp.exp(s)
            p = e * pl.reciprocal(jnp.sum(e, axis=-1, keepdims=True),
                                  approx=True)
            attn_ref[:, :, lo:hi] = jnp.einsum(
                'bqk,bkd->bqd', p.astype(jnp.bfloat16), vh,
                preferred_element_type=jnp.float32)

        # multi_head_combine (one MXU pass over the full HD contraction).
        mh = jnp.dot(attn_ref[...].reshape(TB * S, HD).astype(jnp.bfloat16),
                     wc, preferred_element_type=jnp.float32) + bc   # (TB*S, E)

        # Add & InstanceNorm1d #1
        out1 = instance_norm((x2 + mh).reshape(TB, S, E), g1, be1)

        # Feed-forward: W2(relu(W1(x)))
        h1 = jnp.maximum(
            jnp.dot(out1.reshape(TB * S, E).astype(jnp.bfloat16), w1,
                    preferred_element_type=jnp.float32) + b1, 0.0)
        ff = jnp.dot(h1.astype(jnp.bfloat16), w2,
                     preferred_element_type=jnp.float32) + b2       # (TB*S, E)

        # Add & InstanceNorm1d #2
        return instance_norm(out1 + ff.reshape(TB, S, E), g2, be2)

    act = lax.fori_loop(0, n_layers, layer_body, act)

    # For the real model E = 128 this store is lane-dense.  For E < 128 a
    # flattened (B, S*E) output layout would be denser, but the in-kernel
    # (TB, S, E) -> (TB, S*E) reshape is a lane relayout Mosaic may reject,
    # so the straightforward store is kept for robustness.
    o_ref[...] = act


# ----------------------------------------------------------------------------
# Wrapper: pack weights, pick batch tile, launch the fused kernel.
# ----------------------------------------------------------------------------
def _pick_tb(batch, seq, target_rows=512):
    """Batch elements per grid step.

    Aims for ~target_rows rows in the flattened (TB*S, .) matmuls (fills the
    256-wide MXU on v6e/v7x and amortizes per-grid-step overhead), requires
    TB | batch, and keeps at least 2 grid steps when batch >= 2 so the
    'parallel' batch axis can be split across the two v7x TensorCores.
    """
    tb = max(1, min(batch, max(1, target_rows // max(seq, 1))))
    while batch % tb != 0:
        tb -= 1
    if batch >= 2 and batch // tb < 2:
        tb = max(1, batch // 2)
        while batch % tb != 0:
            tb -= 1
    return tb


def tsp_encoder_forward(data, params, head_num, qkv_dim):
    B, S, _ = data.shape
    E = params["emb_w"].shape[1]
    HD = head_num * qkv_dim
    F = params["layers"][0]["w1"].shape[1]
    L = len(params["layers"])
    VMAX = max(E, F)
    TB = _pick_tb(B, S)

    inv_sqrt_d = 1.0 / float(qkv_dim) ** 0.5

    # Stack per-layer weights; fold score scale into Wq; cast matmul weights
    # to bf16 (accumulation stays f32 inside the kernel).
    wqkv = jnp.stack(
        [jnp.concatenate([lp["wq"] * inv_sqrt_d, lp["wk"], lp["wv"]], axis=1)
         for lp in params["layers"]], axis=0).astype(jnp.bfloat16)   # (L,E,3HD)
    wc = jnp.stack([lp["wc"] for lp in params["layers"]], 0).astype(jnp.bfloat16)
    w1 = jnp.stack([lp["w1"] for lp in params["layers"]], 0).astype(jnp.bfloat16)
    w2 = jnp.stack([lp["w2"] for lp in params["layers"]], 0).astype(jnp.bfloat16)

    def _pad_row(v):
        return jnp.pad(v, ((0, 0), (0, VMAX - v.shape[1])))

    vecs = jnp.stack(
        [jnp.concatenate(
            [_pad_row(lp[k]) for k in ("bc", "g1", "be1", "b1", "b2", "g2", "be2")],
            axis=0)
         for lp in params["layers"]], axis=0).astype(jnp.float32)    # (L,7,VMAX)

    # Explicit scoped-VMEM budget: resident weights + double-buffered IO +
    # attention scratch + in-flight intermediates, with headroom.  Clamped to
    # 64 MiB so the same number is safe on v5e/v6e (128 MiB) and v7x (64 MiB).
    weight_bytes = 2 * L * (E * 3 * HD + HD * E + E * F + F * E) \
        + 4 * (L * 7 * VMAX + 3 * E)
    io_bytes = 4 * TB * S * (2 + E)
    scratch_bytes = 4 * TB * S * HD
    interm_bytes = 4 * TB * S * (3 * HD + F + 4 * E + 2 * S)
    need = 2 * (weight_bytes + io_bytes) + scratch_bytes + interm_bytes
    vmem_limit = int(min(max(2 * need, 32 * 2 ** 20), 64 * 2 ** 20))

    kernel = functools.partial(_encoder_kernel, head_num, qkv_dim, L)

    def full(shape):
        # Constant block index across the grid -> the pipeliner DMAs these
        # weight stacks once and keeps them VMEM-resident.
        n = len(shape)
        return pl.BlockSpec(shape, lambda bb, _n=n: (0,) * _n)

    return pl.pallas_call(
        kernel,
        out_shape=jax.ShapeDtypeStruct((B, S, E), jnp.float32),
        grid=(B // TB,),
        in_specs=[
            pl.BlockSpec((TB, S, 2), lambda bb: (bb, 0, 0)),   # coordinates
            full((2, E)),              # embedding W
            full((1, E)),              # embedding b
            full((L, E, 3 * HD)),      # fused Wq|Wk|Wv (scaled Wq), bf16
            full((L, HD, E)),          # multi_head_combine W, bf16
            full((L, E, F)),           # FF W1, bf16
            full((L, F, E)),           # FF W2, bf16
            full((L, 7, VMAX)),        # packed small vectors, f32
        ],
        out_specs=pl.BlockSpec((TB, S, E), lambda bb: (bb, 0, 0)),
        scratch_shapes=[pltpu.VMEM((TB, S, HD), jnp.float32)],  # head outputs
        compiler_params=pltpu.CompilerParams(
            dimension_semantics=("parallel",),
            vmem_limit_bytes=vmem_limit),
    )(data, params["emb_w"], params["emb_b"], wqkv, wc, w1, w2, vecs)


# ----------------------------------------------------------------------------
# Parameter init (mirrors the PyTorch module's parameters, stored f32)
# ----------------------------------------------------------------------------
def init_params(key, embedding_dim, head_num, qkv_dim, ff_hidden_dim, n_layers):
    E, HD, F = embedding_dim, head_num * qkv_dim, ff_hidden_dim
    keys = jax.random.split(key, 2 + n_layers)
    params = {
        "emb_w": 0.1 * jax.random.normal(keys[0], (2, E), jnp.float32),
        "emb_b": 0.1 * jax.random.normal(keys[1], (1, E), jnp.float32),
        "layers": [],
    }
    for li in range(n_layers):
        ks = jax.random.split(keys[2 + li], 10)
        params["layers"].append({
            "wq": 0.1 * jax.random.normal(ks[0], (E, HD), jnp.float32),
            "wk": 0.1 * jax.random.normal(ks[1], (E, HD), jnp.float32),
            "wv": 0.1 * jax.random.normal(ks[2], (E, HD), jnp.float32),
            "wc": 0.1 * jax.random.normal(ks[3], (HD, E), jnp.float32),
            "bc": 0.1 * jax.random.normal(ks[4], (1, E), jnp.float32),
            "g1": jnp.ones((1, E), jnp.float32),    # InstanceNorm affine weight
            "be1": jnp.zeros((1, E), jnp.float32),  # InstanceNorm affine bias
            "w1": 0.1 * jax.random.normal(ks[5], (E, F), jnp.float32),
            "b1": 0.1 * jax.random.normal(ks[6], (1, F), jnp.float32),
            "w2": 0.1 * jax.random.normal(ks[7], (F, E), jnp.float32),
            "b2": 0.1 * jax.random.normal(ks[8], (1, E), jnp.float32),
            "g2": jnp.ones((1, E), jnp.float32),
            "be2": jnp.zeros((1, E), jnp.float32),
        })
    return params


if __name__ == "__main__":
    # Small model config (real model uses E=128, head_num=8, qkv_dim=16, F=512)
    embedding_dim = 32
    head_num = 4
    qkv_dim = 8
    ff_hidden_dim = 64
    encoder_layer_num = 3

    batch = 2
    problem_size = 8   # number of TSP nodes (seq length)

    key = jax.random.PRNGKey(0)
    k_data, k_params = jax.random.split(key)
    data = jax.random.uniform(k_data, (batch, problem_size, 2), jnp.float32)

    params = init_params(
        k_params, embedding_dim, head_num, qkv_dim, ff_hidden_dim,
        encoder_layer_num)

    out = tsp_encoder_forward(data, params, head_num, qkv_dim)
    out = jax.block_until_ready(out)
    assert out.shape == (batch, problem_size, embedding_dim)
    assert bool(jnp.all(jnp.isfinite(out)))
    print("KERNEL_OK")
</pallas_src>

<mosaic_0001>
module attributes {stable_mosaic.version = 11 : i64} {
  func.func @_encoder_kernel(%arg0: i32, %arg1: memref<1x8x2xf32, #tpu.memory_space<vmem>>, %arg2: memref<2x32xf32, #tpu.memory_space<vmem>>, %arg3: memref<1x32xf32, #tpu.memory_space<vmem>>, %arg4: memref<3x32x96xbf16, #tpu.memory_space<vmem>>, %arg5: memref<3x32x32xbf16, #tpu.memory_space<vmem>>, %arg6: memref<3x32x64xbf16, #tpu.memory_space<vmem>>, %arg7: memref<3x64x32xbf16, #tpu.memory_space<vmem>>, %arg8: memref<3x7x64xf32, #tpu.memory_space<vmem>>, %arg9: memref<1x8x32xf32, #tpu.memory_space<vmem>>, %arg10: memref<1x8x32xf32, #tpu.memory_space<vmem>>) attributes {dimension_semantics = [#tpu.dimension_semantics<parallel>], iteration_bounds = array<i64: 2>, scalar_prefetch = 0 : i64, scratch_operands = 1 : i64, tpu.core_type = #tpu.core_type<tc>, window_params = [{transform_indices = @transform_0, window_bounds = array<i64: 1, 8, 2>}, {pipeline_mode = #tpu.pipeline_mode<synchronous>, transform_indices = @transform_1, window_bounds = array<i64: 2, 32>}, {pipeline_mode = #tpu.pipeline_mode<synchronous>, transform_indices = @transform_2, window_bounds = array<i64: 1, 32>}, {pipeline_mode = #tpu.pipeline_mode<synchronous>, transform_indices = @transform_3, window_bounds = array<i64: 3, 32, 96>}, {pipeline_mode = #tpu.pipeline_mode<synchronous>, transform_indices = @transform_4, window_bounds = array<i64: 3, 32, 32>}, {pipeline_mode = #tpu.pipeline_mode<synchronous>, transform_indices = @transform_5, window_bounds = array<i64: 3, 32, 64>}, {pipeline_mode = #tpu.pipeline_mode<synchronous>, transform_indices = @transform_6, window_bounds = array<i64: 3, 64, 32>}, {pipeline_mode = #tpu.pipeline_mode<synchronous>, transform_indices = @transform_7, window_bounds = array<i64: 3, 7, 64>}, {transform_indices = @transform_8, window_bounds = array<i64: 1, 8, 32>}]} {
    %c0 = arith.constant 0 : index
    %c0_0 = arith.constant 0 : index
    %c0_1 = arith.constant 0 : index
    %0 = vector.load %arg1[%c0, %c0_0, %c0_1] : memref<1x8x2xf32, #tpu.memory_space<vmem>>, vector<1x8x2xf32>
    %c0_2 = arith.constant 0 : index
    %c0_3 = arith.constant 0 : index
    %1 = vector.load %arg2[%c0_2, %c0_3] : memref<2x32xf32, #tpu.memory_space<vmem>>, vector<2x32xf32>
    %2 = vector.extract_strided_slice %0 {offsets = [0, 0, 0], sizes = [1, 8, 1], strides = [1, 1, 1]} : vector<1x8x2xf32> to vector<1x8x1xf32>
    %3 = vector.extract_strided_slice %1 {offsets = [0, 0], sizes = [1, 32], strides = [1, 1]} : vector<2x32xf32> to vector<1x32xf32>
    %4 = vector.shape_cast %3 : vector<1x32xf32> to vector<1x1x32xf32>
    %5 = vector.broadcast %2 : vector<1x8x1xf32> to vector<1x8x32xf32>
    %6 = vector.broadcast %4 : vector<1x1x32xf32> to vector<1x8x32xf32>
    %7 = arith.mulf %5, %6 : vector<1x8x32xf32>
    %8 = vector.extract_strided_slice %0 {offsets = [0, 0, 1], sizes = [1, 8, 1], strides = [1, 1, 1]} : vector<1x8x2xf32> to vector<1x8x1xf32>
    %9 = vector.extract_strided_slice %1 {offsets = [1, 0], sizes = [1, 32], strides = [1, 1]} : vector<2x32xf32> to vector<1x32xf32>
    %10 = vector.shape_cast %9 : vector<1x32xf32> to vector<1x1x32xf32>
    %11 = vector.broadcast %8 : vector<1x8x1xf32> to vector<1x8x32xf32>
    %12 = vector.broadcast %10 : vector<1x1x32xf32> to vector<1x8x32xf32>
    %13 = arith.mulf %11, %12 : vector<1x8x32xf32>
    %14 = arith.addf %7, %13 : vector<1x8x32xf32>
    %c0_4 = arith.constant 0 : index
    %c0_5 = arith.constant 0 : index
    %15 = vector.load %arg3[%c0_4, %c0_5] : memref<1x32xf32, #tpu.memory_space<vmem>>, vector<1x32xf32>
    %16 = vector.shape_cast %15 : vector<1x32xf32> to vector<1x1x32xf32>
    %17 = vector.broadcast %16 : vector<1x1x32xf32> to vector<1x8x32xf32>
    %18 = arith.addf %14, %17 : vector<1x8x32xf32>
    %c0_i32 = arith.constant 0 : i32
    %c3_i32 = arith.constant 3 : i32
    %19 = arith.addi %c0_i32, %c3_i32 : i32
    %c1_i32 = arith.constant 1 : i32
    %20 = scf.for %arg11 = %c0_i32 to %19 step %c1_i32 iter_args(%arg12 = %18) -> (vector<1x8x32xf32>)  : i32 {
      %22 = arith.index_cast %arg11 : i32 to index
      %c0_10 = arith.constant 0 : index
      %c0_11 = arith.constant 0 : index
      %23 = vector.load %arg4[%22, %c0_10, %c0_11] : memref<3x32x96xbf16, #tpu.memory_space<vmem>>, vector<1x32x96xbf16>
      %24 = vector.shape_cast %23 : vector<1x32x96xbf16> to vector<32x96xbf16>
      %25 = arith.index_cast %arg11 : i32 to index
      %c0_12 = arith.constant 0 : index
      %c0_13 = arith.constant 0 : index
      %26 = vector.load %arg5[%25, %c0_12, %c0_13] : memref<3x32x32xbf16, #tpu.memory_space<vmem>>, vector<1x32x32xbf16>
      %27 = vector.shape_cast %26 : vector<1x32x32xbf16> to vector<32x32xbf16>
      %28 = arith.index_cast %arg11 : i32 to index
      %c0_14 = arith.constant 0 : index
      %c0_15 = arith.constant 0 : index
      %29 = vector.load %arg6[%28, %c0_14, %c0_15] : memref<3x32x64xbf16, #tpu.memory_space<vmem>>, vector<1x32x64xbf16>
      %30 = vector.shape_cast %29 : vector<1x32x64xbf16> to vector<32x64xbf16>
      %31 = arith.index_cast %arg11 : i32 to index
      %c0_16 = arith.constant 0 : index
      %c0_17 = arith.constant 0 : index
      %32 = vector.load %arg7[%31, %c0_16, %c0_17] : memref<3x64x32xbf16, #tpu.memory_space<vmem>>, vector<1x64x32xbf16>
      %33 = vector.shape_cast %32 : vector<1x64x32xbf16> to vector<64x32xbf16>
      %34 = arith.index_cast %arg11 : i32 to index
      %c0_18 = arith.constant 0 : index
      %c0_19 = arith.constant 0 : index
      %35 = vector.load %arg8[%34, %c0_18, %c0_19] : memref<3x7x64xf32, #tpu.memory_space<vmem>>, vector<1x7x64xf32>
      %36 = vector.shape_cast %35 : vector<1x7x64xf32> to vector<7x64xf32>
      %37 = vector.extract_strided_slice %36 {offsets = [0, 0], sizes = [1, 32], strides = [1, 1]} : vector<7x64xf32> to vector<1x32xf32>
      %38 = vector.extract_strided_slice %36 {offsets = [1, 0], sizes = [1, 32], strides = [1, 1]} : vector<7x64xf32> to vector<1x32xf32>
      %39 = vector.extract_strided_slice %36 {offsets = [2, 0], sizes = [1, 32], strides = [1, 1]} : vector<7x64xf32> to vector<1x32xf32>
      %40 = vector.extract_strided_slice %36 {offsets = [3, 0], sizes = [1, 64], strides = [1, 1]} : vector<7x64xf32> to vector<1x64xf32>
      %41 = vector.extract_strided_slice %36 {offsets = [4, 0], sizes = [1, 32], strides = [1, 1]} : vector<7x64xf32> to vector<1x32xf32>
      %42 = vector.extract_strided_slice %36 {offsets = [5, 0], sizes = [1, 32], strides = [1, 1]} : vector<7x64xf32> to vector<1x32xf32>
      %43 = vector.extract_strided_slice %36 {offsets = [6, 0], sizes = [1, 32], strides = [1, 1]} : vector<7x64xf32> to vector<1x32xf32>
      %44 = vector.shape_cast %arg12 : vector<1x8x32xf32> to vector<8x32xf32>
      %45 = arith.truncf %44 : vector<8x32xf32> to vector<8x32xbf16>
      %cst = arith.constant dense<0.000000e+00> : vector<8x96xf32>
      %46 = tpu.matmul %45, %24, %cst {dimension_numbers = #tpu.dot_dimension_numbers<[1], [0], [0], [1], [0, 0, 1, 1], [], []>} : vector<8x32xbf16>, vector<32x96xbf16>, vector<8x96xf32> -> vector<8x96xf32>
      %47 = vector.shape_cast %46 : vector<8x96xf32> to vector<1x8x96xf32>
      %48 = arith.truncf %47 : vector<1x8x96xf32> to vector<1x8x96xbf16>
      %49 = vector.extract_strided_slice %48 {offsets = [0, 0, 0], sizes = [1, 8, 32], strides = [1, 1, 1]} : vector<1x8x96xbf16> to vector<1x8x32xbf16>
      %50 = vector.extract_strided_slice %48 {offsets = [0, 0, 32], sizes = [1, 8, 32], strides = [1, 1, 1]} : vector<1x8x96xbf16> to vector<1x8x32xbf16>
      %51 = vector.extract_strided_slice %48 {offsets = [0, 0, 64], sizes = [1, 8, 32], strides = [1, 1, 1]} : vector<1x8x96xbf16> to vector<1x8x32xbf16>
      %52 = vector.extract_strided_slice %49 {offsets = [0, 0, 0], sizes = [1, 8, 8], strides = [1, 1, 1]} : vector<1x8x32xbf16> to vector<1x8x8xbf16>
      %53 = vector.extract_strided_slice %50 {offsets = [0, 0, 0], sizes = [1, 8, 8], strides = [1, 1, 1]} : vector<1x8x32xbf16> to vector<1x8x8xbf16>
      %54 = vector.extract_strided_slice %51 {offsets = [0, 0, 0], sizes = [1, 8, 8], strides = [1, 1, 1]} : vector<1x8x32xbf16> to vector<1x8x8xbf16>
      "tpu.trace_start"() <{level = 10 : i32, message = "bqd,bkd->bqk"}> : () -> ()
      %cst_20 = arith.constant dense<0.000000e+00> : vector<1x8x8xf32>
      %55 = tpu.matmul %52, %53, %cst_20 {dimension_numbers = #tpu.dot_dimension_numbers<[2], [2], [1], [1], [0, 0, 0, 1, 1, 1], [0], [0]>} : vector<1x8x8xbf16>, vector<1x8x8xbf16>, vector<1x8x8xf32> -> vector<1x8x8xf32>
      "tpu.trace_stop"() : () -> ()
      %cst_21 = arith.constant dense<0xFF800000> : vector<1x8xf32>
      %56 = vector.multi_reduction <maximumf>, %55, %cst_21 [2] : vector<1x8x8xf32> to vector<1x8xf32>
      %57 = vector.shape_cast %56 : vector<1x8xf32> to vector<1x8x1xf32>
      %58 = vector.broadcast %57 : vector<1x8x1xf32> to vector<1x8x8xf32>
      %59 = arith.subf %55, %58 : vector<1x8x8xf32>
      %60 = math.exp %59 : vector<1x8x8xf32>
      %cst_22 = arith.constant dense<0.000000e+00> : vector<1x8xf32>
      %61 = vector.multi_reduction <add>, %60, %cst_22 [2] : vector<1x8x8xf32> to vector<1x8xf32>
      %62 = vector.shape_cast %61 : vector<1x8xf32> to vector<1x8x1xf32>
      %63 = tpu.reciprocal %62 {approx = true} : vector<1x8x1xf32> -> vector<1x8x1xf32>
      %64 = vector.broadcast %63 : vector<1x8x1xf32> to vector<1x8x8xf32>
      %65 = arith.mulf %60, %64 : vector<1x8x8xf32>
      %66 = arith.truncf %65 : vector<1x8x8xf32> to vector<1x8x8xbf16>
      "tpu.trace_start"() <{level = 10 : i32, message = "bqk,bkd->bqd"}> : () -> ()
      %cst_23 = arith.constant dense<0.000000e+00> : vector<1x8x8xf32>
      %67 = tpu.matmul %66, %54, %cst_23 {dimension_numbers = #tpu.dot_dimension_numbers<[2], [1], [1], [2], [0, 0, 0, 1, 1, 2], [0], [0]>} : vector<1x8x8xbf16>, vector<1x8x8xbf16>, vector<1x8x8xf32> -> vector<1x8x8xf32>
      "tpu.trace_stop"() : () -> ()
      %c0_24 = arith.constant 0 : index
      %c0_25 = arith.constant 0 : index
      %c0_26 = arith.constant 0 : index
      %68 = vector.load %arg10[%c0_24, %c0_25, %c0_26] : memref<1x8x32xf32, #tpu.memory_space<vmem>>, vector<1x8x8xf32>
      tpu.vector_store %arg10[%c0_24, %c0_25, %c0_26], %67 {strides = array<i32>} : memref<1x8x32xf32, #tpu.memory_space<vmem>>, vector<1x8x8xf32>,
      %69 = vector.extract_strided_slice %49 {offsets = [0, 0, 8], sizes = [1, 8, 8], strides = [1, 1, 1]} : vector<1x8x32xbf16> to vector<1x8x8xbf16>
      %70 = vector.extract_strided_slice %50 {offsets = [0, 0, 8], sizes = [1, 8, 8], strides = [1, 1, 1]} : vector<1x8x32xbf16> to vector<1x8x8xbf16>
      %71 = vector.extract_strided_slice %51 {offsets = [0, 0, 8], sizes = [1, 8, 8], strides = [1, 1, 1]} : vector<1x8x32xbf16> to vector<1x8x8xbf16>
      "tpu.trace_start"() <{level = 10 : i32, message = "bqd,bkd->bqk"}> : () -> ()
      %cst_27 = arith.constant dense<0.000000e+00> : vector<1x8x8xf32>
      %72 = tpu.matmul %69, %70, %cst_27 {dimension_numbers = #tpu.dot_dimension_numbers<[2], [2], [1], [1], [0, 0, 0, 1, 1, 1], [0], [0]>} : vector<1x8x8xbf16>, vector<1x8x8xbf16>, vector<1x8x8xf32> -> vector<1x8x8xf32>
      "tpu.trace_stop"() : () -> ()
      %cst_28 = arith.constant dense<0xFF800000> : vector<1x8xf32>
      %73 = vector.multi_reduction <maximumf>, %72, %cst_28 [2] : vector<1x8x8xf32> to vector<1x8xf32>
      %74 = vector.shape_cast %73 : vector<1x8xf32> to vector<1x8x1xf32>
      %75 = vector.broadcast %74 : vector<1x8x1xf32> to vector<1x8x8xf32>
      %76 = arith.subf %72, %75 : vector<1x8x8xf32>
      %77 = math.exp %76 : vector<1x8x8xf32>
      %cst_29 = arith.constant dense<0.000000e+00> : vector<1x8xf32>
      %78 = vector.multi_reduction <add>, %77, %cst_29 [2] : vector<1x8x8xf32> to vector<1x8xf32>
      %79 = vector.shape_cast %78 : vector<1x8xf32> to vector<1x8x1xf32>
      %80 = tpu.reciprocal %79 {approx = true} : vector<1x8x1xf32> -> vector<1x8x1xf32>
      %81 = vector.broadcast %80 : vector<1x8x1xf32> to vector<1x8x8xf32>
      %82 = arith.mulf %77, %81 : vector<1x8x8xf32>
      %83 = arith.truncf %82 : vector<1x8x8xf32> to vector<1x8x8xbf16>
      "tpu.trace_start"() <{level = 10 : i32, message = "bqk,bkd->bqd"}> : () -> ()
      %cst_30 = arith.constant dense<0.000000e+00> : vector<1x8x8xf32>
      %84 = tpu.matmul %83, %71, %cst_30 {dimension_numbers = #tpu.dot_dimension_numbers<[2], [1], [1], [2], [0, 0, 0, 1, 1, 2], [0], [0]>} : vector<1x8x8xbf16>, vector<1x8x8xbf16>, vector<1x8x8xf32> -> vector<1x8x8xf32>
      "tpu.trace_stop"() : () -> ()
      %c0_31 = arith.constant 0 : index
      %c0_32 = arith.constant 0 : index
      %c8 = arith.constant 8 : index
      %85 = vector.load %arg10[%c0_31, %c0_32, %c8] : memref<1x8x32xf32, #tpu.memory_space<vmem>>, vector<1x8x8xf32>
      tpu.vector_store %arg10[%c0_31, %c0_32, %c8], %84 {strides = array<i32>} : memref<1x8x32xf32, #tpu.memory_space<vmem>>, vector<1x8x8xf32>,
      %86 = vector.extract_strided_slice %49 {offsets = [0, 0, 16], sizes = [1, 8, 8], strides = [1, 1, 1]} : vector<1x8x32xbf16> to vector<1x8x8xbf16>
      %87 = vector.extract_strided_slice %50 {offsets = [0, 0, 16], sizes = [1, 8, 8], strides = [1, 1, 1]} : vector<1x8x32xbf16> to vector<1x8x8xbf16>
      %88 = vector.extract_strided_slice %51 {offsets = [0, 0, 16], sizes = [1, 8, 8], strides = [1, 1, 1]} : vector<1x8x32xbf16> to vector<1x8x8xbf16>
      "tpu.trace_start"() <{level = 10 : i32, message = "bqd,bkd->bqk"}> : () -> ()
      %cst_33 = arith.constant dense<0.000000e+00> : vector<1x8x8xf32>
      %89 = tpu.matmul %86, %87, %cst_33 {dimension_numbers = #tpu.dot_dimension_numbers<[2], [2], [1], [1], [0, 0, 0, 1, 1, 1], [0], [0]>} : vector<1x8x8xbf16>, vector<1x8x8xbf16>, vector<1x8x8xf32> -> vector<1x8x8xf32>
      "tpu.trace_stop"() : () -> ()
      %cst_34 = arith.constant dense<0xFF800000> : vector<1x8xf32>
      %90 = vector.multi_reduction <maximumf>, %89, %cst_34 [2] : vector<1x8x8xf32> to vector<1x8xf32>
      %91 = vector.shape_cast %90 : vector<1x8xf32> to vector<1x8x1xf32>
      %92 = vector.broadcast %91 : vector<1x8x1xf32> to vector<1x8x8xf32>
      %93 = arith.subf %89, %92 : vector<1x8x8xf32>
      %94 = math.exp %93 : vector<1x8x8xf32>
      %cst_35 = arith.constant dense<0.000000e+00> : vector<1x8xf32>
      %95 = vector.multi_reduction <add>, %94, %cst_35 [2] : vector<1x8x8xf32> to vector<1x8xf32>
      %96 = vector.shape_cast %95 : vector<1x8xf32> to vector<1x8x1xf32>
      %97 = tpu.reciprocal %96 {approx = true} : vector<1x8x1xf32> -> vector<1x8x1xf32>
      %98 = vector.broadcast %97 : vector<1x8x1xf32> to vector<1x8x8xf32>
      %99 = arith.mulf %94, %98 : vector<1x8x8xf32>
      %100 = arith.truncf %99 : vector<1x8x8xf32> to vector<1x8x8xbf16>
      "tpu.trace_start"() <{level = 10 : i32, message = "bqk,bkd->bqd"}> : () -> ()
      %cst_36 = arith.constant dense<0.000000e+00> : vector<1x8x8xf32>
      %101 = tpu.matmul %100, %88, %cst_36 {dimension_numbers = #tpu.dot_dimension_numbers<[2], [1], [1], [2], [0, 0, 0, 1, 1, 2], [0], [0]>} : vector<1x8x8xbf16>, vector<1x8x8xbf16>, vector<1x8x8xf32> -> vector<1x8x8xf32>
      "tpu.trace_stop"() : () -> ()
      %c0_37 = arith.constant 0 : index
      %c0_38 = arith.constant 0 : index
      %c16 = arith.constant 16 : index
      %102 = vector.load %arg10[%c0_37, %c0_38, %c16] : memref<1x8x32xf32, #tpu.memory_space<vmem>>, vector<1x8x8xf32>
      tpu.vector_store %arg10[%c0_37, %c0_38, %c16], %101 {strides = array<i32>} : memref<1x8x32xf32, #tpu.memory_space<vmem>>, vector<1x8x8xf32>,
      %103 = vector.extract_strided_slice %49 {offsets = [0, 0, 24], sizes = [1, 8, 8], strides = [1, 1, 1]} : vector<1x8x32xbf16> to vector<1x8x8xbf16>
      %104 = vector.extract_strided_slice %50 {offsets = [0, 0, 24], sizes = [1, 8, 8], strides = [1, 1, 1]} : vector<1x8x32xbf16> to vector<1x8x8xbf16>
      %105 = vector.extract_strided_slice %51 {offsets = [0, 0, 24], sizes = [1, 8, 8], strides = [1, 1, 1]} : vector<1x8x32xbf16> to vector<1x8x8xbf16>
      "tpu.trace_start"() <{level = 10 : i32, message = "bqd,bkd->bqk"}> : () -> ()
      %cst_39 = arith.constant dense<0.000000e+00> : vector<1x8x8xf32>
      %106 = tpu.matmul %103, %104, %cst_39 {dimension_numbers = #tpu.dot_dimension_numbers<[2], [2], [1], [1], [0, 0, 0, 1, 1, 1], [0], [0]>} : vector<1x8x8xbf16>, vector<1x8x8xbf16>, vector<1x8x8xf32> -> vector<1x8x8xf32>
      "tpu.trace_stop"() : () -> ()
      %cst_40 = arith.constant dense<0xFF800000> : vector<1x8xf32>
      %107 = vector.multi_reduction <maximumf>, %106, %cst_40 [2] : vector<1x8x8xf32> to vector<1x8xf32>
      %108 = vector.shape_cast %107 : vector<1x8xf32> to vector<1x8x1xf32>
      %109 = vector.broadcast %108 : vector<1x8x1xf32> to vector<1x8x8xf32>
      %110 = arith.subf %106, %109 : vector<1x8x8xf32>
      %111 = math.exp %110 : vector<1x8x8xf32>
      %cst_41 = arith.constant dense<0.000000e+00> : vector<1x8xf32>
      %112 = vector.multi_reduction <add>, %111, %cst_41 [2] : vector<1x8x8xf32> to vector<1x8xf32>
      %113 = vector.shape_cast %112 : vector<1x8xf32> to vector<1x8x1xf32>
      %114 = tpu.reciprocal %113 {approx = true} : vector<1x8x1xf32> -> vector<1x8x1xf32>
      %115 = vector.broadcast %114 : vector<1x8x1xf32> to vector<1x8x8xf32>
      %116 = arith.mulf %111, %115 : vector<1x8x8xf32>
      %117 = arith.truncf %116 : vector<1x8x8xf32> to vector<1x8x8xbf16>
      "tpu.trace_start"() <{level = 10 : i32, message = "bqk,bkd->bqd"}> : () -> ()
      %cst_42 = arith.constant dense<0.000000e+00> : vector<1x8x8xf32>
      %118 = tpu.matmul %117, %105, %cst_42 {dimension_numbers = #tpu.dot_dimension_numbers<[2], [1], [1], [2], [0, 0, 0, 1, 1, 2], [0], [0]>} : vector<1x8x8xbf16>, vector<1x8x8xbf16>, vector<1x8x8xf32> -> vector<1x8x8xf32>
      "tpu.trace_stop"() : () -> ()
      %c0_43 = arith.constant 0 : index
      %c0_44 = arith.constant 0 : index
      %c24 = arith.constant 24 : index
      %119 = vector.load %arg10[%c0_43, %c0_44, %c24] : memref<1x8x32xf32, #tpu.memory_space<vmem>>, vector<1x8x8xf32>
      tpu.vector_store %arg10[%c0_43, %c0_44, %c24], %118 {strides = array<i32>} : memref<1x8x32xf32, #tpu.memory_space<vmem>>, vector<1x8x8xf32>,
      %c0_45 = arith.constant 0 : index
      %c0_46 = arith.constant 0 : index
      %c0_47 = arith.constant 0 : index
      %120 = vector.load %arg10[%c0_45, %c0_46, %c0_47] : memref<1x8x32xf32, #tpu.memory_space<vmem>>, vector<1x8x32xf32>
      %121 = vector.shape_cast %120 : vector<1x8x32xf32> to vector<8x32xf32>
      %122 = arith.truncf %121 : vector<8x32xf32> to vector<8x32xbf16>
      %cst_48 = arith.constant dense<0.000000e+00> : vector<8x32xf32>
      %123 = tpu.matmul %122, %27, %cst_48 {dimension_numbers = #tpu.dot_dimension_numbers<[1], [0], [0], [1], [0, 0, 1, 1], [], []>} : vector<8x32xbf16>, vector<32x32xbf16>, vector<8x32xf32> -> vector<8x32xf32>
      %124 = vector.broadcast %37 : vector<1x32xf32> to vector<8x32xf32>
      %125 = arith.addf %123, %124 : vector<8x32xf32>
      %126 = arith.addf %44, %125 : vector<8x32xf32>
      %127 = vector.shape_cast %126 : vector<8x32xf32> to vector<1x8x32xf32>
      %cst_49 = arith.constant dense<0.000000e+00> : vector<1x32xf32>
      %128 = vector.multi_reduction <add>, %127, %cst_49 [1] : vector<1x8x32xf32> to vector<1x32xf32>
      %129 = vector.shape_cast %128 : vector<1x32xf32> to vector<1x1x32xf32>
      %cst_50 = arith.constant 1.250000e-01 : f32
      %130 = vector.broadcast %cst_50 : f32 to vector<1x1x32xf32>
      %131 = arith.mulf %129, %130 : vector<1x1x32xf32>
      %132 = arith.mulf %127, %127 : vector<1x8x32xf32>
      %cst_51 = arith.constant dense<0.000000e+00> : vector<1x32xf32>
      %133 = vector.multi_reduction <add>, %132, %cst_51 [1] : vector<1x8x32xf32> to vector<1x32xf32>
      %134 = vector.shape_cast %133 : vector<1x32xf32> to vector<1x1x32xf32>
      %cst_52 = arith.constant 1.250000e-01 : f32
      %135 = vector.broadcast %cst_52 : f32 to vector<1x1x32xf32>
      %136 = arith.mulf %134, %135 : vector<1x1x32xf32>
      %137 = arith.mulf %131, %131 : vector<1x1x32xf32>
      %138 = arith.subf %136, %137 : vector<1x1x32xf32>
      %cst_53 = arith.constant 0.000000e+00 : f32
      %139 = vector.broadcast %cst_53 : f32 to vector<1x1x32xf32>
      %140 = arith.maximumf %138, %139 : vector<1x1x32xf32>
      %141 = vector.broadcast %131 : vector<1x1x32xf32> to vector<1x8x32xf32>
      %142 = arith.subf %127, %141 : vector<1x8x32xf32>
      %cst_54 = arith.constant 9.99999974E-6 : f32
      %143 = vector.broadcast %cst_54 : f32 to vector<1x1x32xf32>
      %144 = arith.addf %140, %143 : vector<1x1x32xf32>
      %145 = math.rsqrt %144 : vector<1x1x32xf32>
      %146 = vector.broadcast %145 : vector<1x1x32xf32> to vector<1x8x32xf32>
      %147 = arith.mulf %142, %146 : vector<1x8x32xf32>
      %148 = vector.shape_cast %38 : vector<1x32xf32> to vector<1x1x32xf32>
      %149 = vector.broadcast %148 : vector<1x1x32xf32> to vector<1x8x32xf32>
      %150 = arith.mulf %147, %149 : vector<1x8x32xf32>
      %151 = vector.shape_cast %39 : vector<1x32xf32> to vector<1x1x32xf32>
      %152 = vector.broadcast %151 : vector<1x1x32xf32> to vector<1x8x32xf32>
      %153 = arith.addf %150, %152 : vector<1x8x32xf32>
      %154 = vector.shape_cast %153 : vector<1x8x32xf32> to vector<8x32xf32>
      %155 = arith.truncf %154 : vector<8x32xf32> to vector<8x32xbf16>
      %cst_55 = arith.constant dense<0.000000e+00> : vector<8x64xf32>
      %156 = tpu.matmul %155, %30, %cst_55 {dimension_numbers = #tpu.dot_dimension_numbers<[1], [0], [0], [1], [0, 0, 1, 1], [], []>} : vector<8x32xbf16>, vector<32x64xbf16>, vector<8x64xf32> -> vector<8x64xf32>
      %157 = vector.broadcast %40 : vector<1x64xf32> to vector<8x64xf32>
      %158 = arith.addf %156, %157 : vector<8x64xf32>
      %cst_56 = arith.constant 0.000000e+00 : f32
      %159 = vector.broadcast %cst_56 : f32 to vector<8x64xf32>
      %160 = arith.maximumf %158, %159 : vector<8x64xf32>
      %161 = arith.truncf %160 : vector<8x64xf32> to vector<8x64xbf16>
      %cst_57 = arith.constant dense<0.000000e+00> : vector<8x32xf32>
      %162 = tpu.matmul %161, %33, %cst_57 {dimension_numbers = #tpu.dot_dimension_numbers<[1], [0], [0], [1], [0, 0, 1, 1], [], []>} : vector<8x64xbf16>, vector<64x32xbf16>, vector<8x32xf32> -> vector<8x32xf32>
      %163 = vector.broadcast %41 : vector<1x32xf32> to vector<8x32xf32>
      %164 = arith.addf %162, %163 : vector<8x32xf32>
      %165 = vector.shape_cast %164 : vector<8x32xf32> to vector<1x8x32xf32>
      %166 = arith.addf %153, %165 : vector<1x8x32xf32>
      %cst_58 = arith.constant dense<0.000000e+00> : vector<1x32xf32>
      %167 = vector.multi_reduction <add>, %166, %cst_58 [1] : vector<1x8x32xf32> to vector<1x32xf32>
      %168 = vector.shape_cast %167 : vector<1x32xf32> to vector<1x1x32xf32>
      %cst_59 = arith.constant 1.250000e-01 : f32
      %169 = vector.broadcast %cst_59 : f32 to vector<1x1x32xf32>
      %170 = arith.mulf %168, %169 : vector<1x1x32xf32>
      %171 = arith.mulf %166, %166 : vector<1x8x32xf32>
      %cst_60 = arith.constant dense<0.000000e+00> : vector<1x32xf32>
      %172 = vector.multi_reduction <add>, %171, %cst_60 [1] : vector<1x8x32xf32> to vector<1x32xf32>
      %173 = vector.shape_cast %172 : vector<1x32xf32> to vector<1x1x32xf32>
      %cst_61 = arith.constant 1.250000e-01 : f32
      %174 = vector.broadcast %cst_61 : f32 to vector<1x1x32xf32>
      %175 = arith.mulf %173, %174 : vector<1x1x32xf32>
      %176 = arith.mulf %170, %170 : vector<1x1x32xf32>
      %177 = arith.subf %175, %176 : vector<1x1x32xf32>
      %cst_62 = arith.constant 0.000000e+00 : f32
      %178 = vector.broadcast %cst_62 : f32 to vector<1x1x32xf32>
      %179 = arith.maximumf %177, %178 : vector<1x1x32xf32>
      %180 = vector.broadcast %170 : vector<1x1x32xf32> to vector<1x8x32xf32>
      %181 = arith.subf %166, %180 : vector<1x8x32xf32>
      %cst_63 = arith.constant 9.99999974E-6 : f32
      %182 = vector.broadcast %cst_63 : f32 to vector<1x1x32xf32>
      %183 = arith.addf %179, %182 : vector<1x1x32xf32>
      %184 = math.rsqrt %183 : vector<1x1x32xf32>
      %185 = vector.broadcast %184 : vector<1x1x32xf32> to vector<1x8x32xf32>
      %186 = arith.mulf %181, %185 : vector<1x8x32xf32>
      %187 = vector.shape_cast %42 : vector<1x32xf32> to vector<1x1x32xf32>
      %188 = vector.broadcast %187 : vector<1x1x32xf32> to vector<1x8x32xf32>
      %189 = arith.mulf %186, %188 : vector<1x8x32xf32>
      %190 = vector.shape_cast %43 : vector<1x32xf32> to vector<1x1x32xf32>
      %191 = vector.broadcast %190 : vector<1x1x32xf32> to vector<1x8x32xf32>
      %192 = arith.addf %189, %191 : vector<1x8x32xf32>
      scf.yield %192 : vector<1x8x32xf32>
    }
    %c3_i32_6 = arith.constant 3 : i32
    %c0_7 = arith.constant 0 : index
    %c0_8 = arith.constant 0 : index
    %c0_9 = arith.constant 0 : index
    %21 = vector.load %arg9[%c0_7, %c0_8, %c0_9] : memref<1x8x32xf32, #tpu.memory_space<vmem>>, vector<1x8x32xf32>
    tpu.vector_store %arg9[%c0_7, %c0_8, %c0_9], %20 {strides = array<i32>} : memref<1x8x32xf32, #tpu.memory_space<vmem>>, vector<1x8x32xf32>,
    return
  }
  func.func @transform_0(%arg0: i32) -> (i32, i32, i32) {
    %c0_i32 = arith.constant 0 : i32
    %c0_i32_0 = arith.constant 0 : i32
    %c0_i32_1 = arith.constant 0 : i32
    return %arg0, %c0_i32, %c0_i32_0 : i32, i32, i32
  }
  func.func @transform_1(%arg0: i32) -> (i32, i32) {
    %c0_i32 = arith.constant 0 : i32
    %c0_i32_0 = arith.constant 0 : i32
    %c0_i32_1 = arith.constant 0 : i32
    return %c0_i32, %c0_i32_0 : i32, i32
  }
  func.func @transform_2(%arg0: i32) -> (i32, i32) {
    %c0_i32 = arith.constant 0 : i32
    %c0_i32_0 = arith.constant 0 : i32
    %c0_i32_1 = arith.constant 0 : i32
    return %c0_i32, %c0_i32_0 : i32, i32
  }
  func.func @transform_3(%arg0: i32) -> (i32, i32, i32) {
    %c0_i32 = arith.constant 0 : i32
    %c0_i32_0 = arith.constant 0 : i32
    %c0_i32_1 = arith.constant 0 : i32
    %c0_i32_2 = arith.constant 0 : i32
    return %c0_i32, %c0_i32_0, %c0_i32_1 : i32, i32, i32
  }
  func.func @transform_4(%arg0: i32) -> (i32, i32, i32) {
    %c0_i32 = arith.constant 0 : i32
    %c0_i32_0 = arith.constant 0 : i32
    %c0_i32_1 = arith.constant 0 : i32
    %c0_i32_2 = arith.constant 0 : i32
    return %c0_i32, %c0_i32_0, %c0_i32_1 : i32, i32, i32
  }
  func.func @transform_5(%arg0: i32) -> (i32, i32, i32) {
    %c0_i32 = arith.constant 0 : i32
    %c0_i32_0 = arith.constant 0 : i32
    %c0_i32_1 = arith.constant 0 : i32
    %c0_i32_2 = arith.constant 0 : i32
    return %c0_i32, %c0_i32_0, %c0_i32_1 : i32, i32, i32
  }
  func.func @transform_6(%arg0: i32) -> (i32, i32, i32) {
    %c0_i32 = arith.constant 0 : i32
    %c0_i32_0 = arith.constant 0 : i32
    %c0_i32_1 = arith.constant 0 : i32
    %c0_i32_2 = arith.constant 0 : i32
    return %c0_i32, %c0_i32_0, %c0_i32_1 : i32, i32, i32
  }
  func.func @transform_7(%arg0: i32) -> (i32, i32, i32) {
    %c0_i32 = arith.constant 0 : i32
    %c0_i32_0 = arith.constant 0 : i32
    %c0_i32_1 = arith.constant 0 : i32
    %c0_i32_2 = arith.constant 0 : i32
    return %c0_i32, %c0_i32_0, %c0_i32_1 : i32, i32, i32
  }
  func.func @transform_8(%arg0: i32) -> (i32, i32, i32) {
    %c0_i32 = arith.constant 0 : i32
    %c0_i32_0 = arith.constant 0 : i32
    %c0_i32_1 = arith.constant 0 : i32
    return %arg0, %c0_i32, %c0_i32_0 : i32, i32, i32
  }
}

</mosaic_0001>

<bundles_post_ra>
// kernel: tpu_custom_call.1
= control target key start
LH: loop header
LB: loop body
LE: loop exit
PB: predicated region body
PF: predicated region fallthrough
CT: control target
= control target key end

     0   :  { %s1929_s0 = inlined_call_operand.vmem [shape: f32[2,8,2], index: 0, kind: input, shape index: {}]   ;;  %s1930_s1 = inlined_call_operand.vmem [shape: f32[2,32], index: 1, kind: input, shape index: {}]   ;;  %s1931_s2 = inlined_call_operand.vmem [shape: f32[1,32], index: 2, kind: input, shape index: {}]   ;;  %s1932_s3 = inlined_call_operand.vmem [shape: bf16[3,32,96], index: 3, kind: input, shape index: {}]   ;;  %s1933_s4 = inlined_call_operand.vmem [shape: bf16[3,32,32], index: 4, kind: input, shape index: {}]   ;;  %s1934_s5 = inlined_call_operand.vmem [shape: bf16[3,32,64], index: 5, kind: input, shape index: {}]   ;;  %s1935_s6 = inlined_call_operand.vmem [shape: bf16[3,64,32], index: 6, kind: input, shape index: {}]   ;;  %s1936_s7 = inlined_call_operand.vmem [shape: f32[3,7,64], index: 7, kind: input, shape index: {}]   ;;  %s1937_s8 = inlined_call_operand.hbm [shape: f32[2,8,32], index: 8, kind: output, shape index: {}]  }
   0x1   :  { %1939 = sst [smem:[#allocation6_spill]] %s1929_s0 }
   0x2   :  { %13 = vsyncpa [#allocation4], 0 }
   0x3   :  { %15 = vsyncpa [#allocation4 + $0x1], 0  ;;  %s1653_s27 = smov 0   ;;  %s1655_s28 = smov 0  }
   0x4   :  { %s1657_s29 = smov 0   ;;  %s1659_s30 = smov 0  }
   0x5 LB: > { %s1674_s9 = sadd.s32 4294967295, %s1579_s30   ;;  %s1247_s10 = sadd.s32 4294967294, %s1579_s30   ;;  %s1579_s30 = sphi %s1659_s30, %s1950_s30   ;;  %s1575_s29 = sphi %s1657_s29, %s1949_s29   ;;  %s1571_s28 = sphi %s1655_s28, %s1948_s28   ;;  %s1567_s27 = sphi %s1653_s27, %s1947_s27  }
   0x6   : > { %s1678_s11 = sadd.s32 1, %s1579_s30   ;;  %s201_s12 = sadd.s32 1, %s1575_s29 }
   0x7   : > { %s198_s13 = ssub.s32 %s1579_s30, %s1678_s11  ;;  %p211_p0 = scmp.ne.s32.totalorder %s1575_s29, %s1571_s28 }
   0x8   : > { %p199_p1 = scmp.eq.s32.totalorder %s198_s13, 0  ;;  %p212_p2 = scmp.eq.s32.totalorder %s1674_s9, 1 }
   0x9   : > { %p217_p3 = scmp.ne.s32.totalorder %s1571_s28, %s1567_s27  ;;  %p218_p4 = scmp.eq.s32.totalorder %s1247_s10, 1 }
   0xa   : > { %s1689_s14 = scalar_select %p199_p1, %s1575_s29, %s201_s12  }
   0xb   : > { %p1691_p5 = por %p212_p2, %p211_p0  ;;  %p1695_p6 = por %p218_p4, %p217_p3 }
   0xc   : > { %p1250_p7 = scmp.ge.s32.totalorder %s1579_s30, 1  ;;  %p264_p8 = scmp.lt.s32.totalorder %s1579_s30, 3 }
   0xe   : > { %p265_p9 = pnand %p1250_p7, %p264_p8 }
   0xf   : > { %p297_p10 = scmp.lt.s32.totalorder (!%p265_p9), %s1674_s9, 1  ;;  %v1589_v0 = vmov (!%p265_p9), 0   ;;  %s1942_s0 = sld [smem:[#allocation6_spill]] (!%p265_p9)  ;;  %v1590_v2 = vmov (!%p265_p9), 1   ;;  %v309_v3 = vlaneseq (!%p265_p9)  ;;  %v303_v7 = vld [vmem:[%s1930_s1] sm:$0x3] (!%p265_p9) }
  0x10   : > { %268 = sbr.rel (%p265_p9) target bundleno = 2186 (0x88a), region = 52  ;;  %1477 = vset.pattern.permute.xlu0 (!%p265_p9), %v1589_v0  ;;  %s1938_s22 = sand.u32 (!%p265_p9), 1, %s1571_s28   ;;  %v1253_v14 = vld [vmem:[%s1931_s2] ss:$0 sm:$0xff] (!%p265_p9) }
  0x11   : > { %s1709_s23 = sshll.u32 (!%p265_p9), %s1938_s22, 3  ;;  %v1711_v4 = vshrl.u32 (!%p265_p9), %v309_v3, 7  ;;  %s1728_s13 = smov (!%p265_p9), 0  }
  0x13   : > { %v311_v5 = vsub.s32 (!%p265_p9), 0, %v1711_v4  ;;  %v320_v6 = vsub.s32 (!%p265_p9), 1, %v1711_v4 }
  0x15   : > { %v312_v9 = vrot.slane (!%p265_p9), %v303_v7, %v311_v5  ;;  %v321_v10 = vrot.slane (!%p265_p9), %v303_v7, %v320_v6 }
  0x17   : > { %s298_s17 = scalar_select %p297_p10, %s1674_s9, 1 }
  0x19   : > { %s1252_s18 = sshll.u32 %s298_s17, 3 }
  0x1a   : > { %s300_s21 = scalar_lea.vmem %s1942_s0, %s1252_s18 }
  0x1b   : > { %v302_v1 = vld [vmem:[%s300_s21] sm:$0xff] }
  0x1c   : > { %306 = vperm.xlu0 %1477, %v302_v1  }
  0x20   : > { %1478 = vset.pattern.permute.xlu0 %v1590_v2 }
  0x21   : > { %315 = vperm.xlu0 %1478, %v302_v1  }
  0x9b   : > { %v307_v8 = vpop.permute.xlu0 %306 }
  0x9c   : > { %v313_v12 = vmul.f32 %v312_v9, %v307_v8 }
  0xa0   : > { %v316_v11 = vpop.permute.xlu0 %315 }
  0xa1   : > { %v322_v13 = vmul.f32 %v321_v10, %v316_v11 }
  0xa3   : > { %v323_v15 = vadd.f32 %v322_v13, %v313_v12 }
  0xa5   : > { %v331_v16 = vadd.f32 %v1253_v14, %v323_v15  }
  0xa6 LB: >> { %v1591_v17 = vmov 0.0   ;;  %vm1592_vm0 = vmmov 0   ;;  %s1286_s17 = sshll.u32 %s1587_s13, 4  ;;  %s1289_s26 = sshll.u32 %s1587_s13, 5  ;;  %vm384_vm1 = vcmask 261120   ;;  %v371_v20 = vpack.c.bf16 %v1583_v16, %v1583_v16  ;;  %s1587_s13 = sphi %s1728_s13, %s337_s13   ;;  %v1583_v16 = vphi %v331_v16, %v1943_v16  }
  0xa7   : >> { %1320 = vmatprep.subr.bf16.mxu0 %v1591_v17  ;;  %1324 = vmatprep.mubr.msk.bf16.mxu0 %vm1592_vm0, %v1591_v17  ;;  %s341_s20 = scalar_lea.vmem %s1932_s3, %s1286_s17  ;;  %s1749_s25 = scalar_lea.vmem %s1933_s4, %s1286_s17  ;;  %vm432_vm2 = vcmask 64512   ;;  %vm496_vm3 = vcmask 1043456   ;;  %vm655_vm4 = vcmask 130112   ;;  %vm771_vm5 = vcmask 195712  }
  0xa8   : >> { %1328 = vmatprep.subr.bf16.mxu1 %v1591_v17  ;;  %1330 = vmatprep.mubr.msk.bf16.mxu1 %vm1592_vm0, %v1591_v17  ;;  %v1479_v18 = vld [vmem:[%s341_s20] sm:$0xff]   ;;  %s1755_s12 = scalar_lea.vmem %s1934_s5, %s1286_s17  ;;  %v1480_v19 = vld [vmem:[%s341_s20 + $0x8] sm:$0xff]   ;;  %s1761_s19 = scalar_lea.vmem %s1935_s6, %s1289_s26  ;;  %vm887_vm6 = vcmask 261312   ;;  %vm1075_vm7 = vcmask 523264  }
  0xa9   : >> { %1321 = vmatpush3.bf16.msra.mxu0 %v1479_v18  ;;  %s1593_s22 = smov 120   ;;  %s1594_s0 = smov 96  }
  0xaa   : >> { %1322 = vmatprep.subr.bf16.mxu0 %v1591_v17  ;;  %s1595_s17 = smov 80   ;;  %s1596_s20 = smov 88  }
  0xab   : >> { %s1597_s21 = smov 72   ;;  %s1598_s24 = smov 112  }
  0xac   : >> { %s1599_s26 = smov 104   ;;  %s1600_s10 = smov 56  }
  0xad   : >> { %1323 = vmatpush3.bf16.msra.mxu0 %v1480_v19  ;;  %s1601_s18 = smov 64  }
  0xae   : >> { %1334 = vmatprep.subr.bf16.mxu0 %v1591_v17 }
  0xb0   : >> { %1325 = vmatmul.mubr.msk.bf16.vlgmr.msra.gmra.mrb[0].mxu0 %vm384_vm1, %v371_v20 }
  0xb1   : >> { %1336 = vmatprep.mubr.msk.bf16.mxu0 %vm1592_vm0, %v1591_v17 }
 0x183   : >> { %v422_v21 = vpop.f32.mrb[0].mxu0 }
 0x184   : >> { %v1769_v22 = vpack.c.bf16 %v422_v21, %v422_v21  ;;  %v1326_v23 = vpop.f32.mrb[1].mxu0 }
 0x185   : >> { %v425_v24 = vpop.f32.mrb[2].mxu0 }
 0x186   : >> { %541 = vrot.lane.b32.xlu1 %v1769_v22, %s1593_s22  ;;  %430 = vrot.lane.b32.xlu0 %v1769_v22, %s1594_s0  ;;  %v1327_v25 = vpop.f32.mrb[3].mxu0  ;;  %s1602_s22 = smov 40   ;;  %s1603_s0 = smov 48  }
 0x18a   : >> { %659 = vrot.lane.b32.xlu1 %v1769_v22, %s1595_s17  ;;  %543 = vrot.lane.b32.xlu0 %v1769_v22, %s1596_s20  ;;  %s1604_s17 = smov 8   ;;  %s1605_s20 = smov 16  }
 0x18e   : >> { %775 = vrot.lane.b32.xlu1 %v1769_v22, %s1597_s21  ;;  %657 = vrot.lane.b32.xlu0 %v1769_v22, %s1598_s24  ;;  %s1606_s21 = smov 24  }
 0x192   : >> { %773 = vrot.lane.b32.xlu0 %v1769_v22, %s1599_s26 }
 0x1f8   : >> { %v431_v26 = vpop.permute.xlu0 %430  ;;  %v542_v29 = vpop.permute.xlu1 %541 }
 0x1f9   : >> { %v437_v27 = vsel %vm432_vm2, %v431_v26, 0 }
 0x1fa   : >> { %1329 = vmatpush3.bf16.xpose.msra.mxu1 %v437_v27 }
 0x1fb   : >> { %1340 = vmatprep.subr.bf16.mxu1 %v1591_v17 }
 0x1fc   : >> { %v544_v28 = vpop.permute.xlu0 %543  ;;  %v660_v31 = vpop.permute.xlu1 %659 }
 0x1fd   : >> { %v549_v30 = vsel %vm432_vm2, %v544_v28, 0  ;;  %v665_v32 = vsel %vm432_vm2, %v660_v31, 0 }
 0x200   : >> { %v776_v33 = vpop.permute.xlu1 %775  ;;  %v658_v34 = vpop.permute.xlu0 %657 }
 0x201   : >> { %1331 = vmatmul.mubr.msk.bf16.vlgmr.msra.gmra.mrb[0].mxu1 %vm432_vm2, %v1769_v22  ;;  %v781_v35 = vsel %vm432_vm2, %v776_v33, 0 }
 0x202   : >> { %1341 = vmatpush3.bf16.xpose.msra.mxu1 %v549_v30  ;;  %1342 = vmatprep.mubr.msk.bf16.mxu1 %vm1592_vm0, %v1591_v17 }
 0x203   : >> { %1352 = vmatprep.subr.bf16.mxu1 %v1591_v17 }
 0x204   : >> { %v774_v36 = vpop.permute.xlu0 %773 }
 0x209   : >> { %1343 = vmatmul.mubr.msk.bf16.vlgmr.msra.gmra.mrb[4].mxu1 %vm432_vm2, %v542_v29 }
 0x20a   : >> { %1353 = vmatpush3.bf16.xpose.msra.mxu1 %v665_v32  ;;  %1354 = vmatprep.mubr.msk.bf16.mxu1 %vm1592_vm0, %v1591_v17 }
 0x20b   : >> { %1364 = vmatprep.subr.bf16.mxu1 %v1591_v17 }
 0x211   : >> { %1355 = vmatmul.mubr.msk.bf16.vlgmr.msra.gmra.mrb[8].mxu1 %vm432_vm2, %v658_v34 }
 0x212   : >> { %1365 = vmatpush3.bf16.xpose.msra.mxu1 %v781_v35  ;;  %1366 = vmatprep.mubr.msk.bf16.mxu1 %vm1592_vm0, %v1591_v17 }
 0x213   : >> { %1376 = vmatprep.subr.bf16.mxu1 %v1591_v17 }
 0x219   : >> { %1367 = vmatmul.mubr.msk.bf16.vlgmr.msra.gmra.mrb[12].mxu1 %vm432_vm2, %v774_v36 }
 0x21a   : >> { %1380 = vmatprep.mubr.msk.bf16.mxu1 %vm1592_vm0, %v1591_v17 }
 0x2d4   : >> { %v473_v37 = vpop.f32.mrb[0].mxu1 }
 0x2d5   : >> { %v1332_v38 = vpop.f32.mrb[1].mxu1  ;;  %v479_v39 = vsel %vm432_vm2, %v473_v37, -inf }
 0x2d6   : >> { %480 = vmax.xlane.f32.xlu1 %v479_v39  ;;  %v476_v40 = vpop.f32.mrb[2].mxu1 }
 0x2d7   : >> { %v1333_v41 = vpop.f32.mrb[3].mxu1 }
 0x2dc   : >> { %v585_v42 = vpop.f32.mrb[4].mxu1 }
 0x2dd   : >> { %v1344_v43 = vpop.f32.mrb[5].mxu1  ;;  %v591_v44 = vsel %vm432_vm2, %v585_v42, -inf }
 0x2de   : >> { %592 = vmax.xlane.f32.xlu0 %v591_v44  ;;  %v588_v45 = vpop.f32.mrb[6].mxu1 }
 0x2df   : >> { %v1345_v46 = vpop.f32.mrb[7].mxu1 }
 0x2e4   : >> { %v701_v47 = vpop.f32.mrb[8].mxu1 }
 0x2e5   : >> { %v1356_v48 = vpop.f32.mrb[9].mxu1  ;;  %v707_v49 = vsel %vm432_vm2, %v701_v47, -inf }
 0x2e6   : >> { %708 = vmax.xlane.f32.xlu0 %v707_v49  ;;  %v704_v50 = vpop.f32.mrb[10].mxu1 }
 0x2e7   : >> { %v1357_v51 = vpop.f32.mrb[11].mxu1  ;;  %v1481_v50 = vld [vmem:[%s1749_s25] sm:$0xff]  }
 0x2e8   : >> { %1377 = vmatpush3.bf16.msra.mxu1 %v1481_v50  ;;  %v1482_v51 = vld [vmem:[%s1749_s25 + $0x8] sm:$0xff]   ;;  %s1258_s25 = sshll.u32 %s1587_s13, 3  ;;  %s337_s13 = sadd.s32 1, %s1587_s13  }
 0x2e9   : >> { %1378 = vmatprep.subr.bf16.mxu1 %v1591_v17  ;;  %p334_p11 = scmp.ge.s32.totalorder %s337_s13, 3  }
 0x2ea   : > { %s1607_s24 = smov (%p334_p11), [#allocation3]  }
 0x2eb   : > { %s1513_s26 = sshll.u32 (%p334_p11), %s1607_s24, 4  ;;  %s1514_s26 = int_to_ptr.vmem [resolvable:$false] %s1513_s26 }
 0x2ec   : >> { %v817_v52 = vpop.f32.mrb[12].mxu1  ;;  %1379 = vmatpush3.bf16.msra.mxu1 %v1482_v51 }
 0x2ed   : >> { %v1368_v53 = vpop.f32.mrb[13].mxu1  ;;  %v823_v54 = vsel %vm432_vm2, %v817_v52, -inf  ;;  %1392 = vmatprep.subr.bf16.mxu1 %v1591_v17 }
 0x2ee   : >> { %824 = vmax.xlane.f32.xlu1 %v823_v54  ;;  %v820_v55 = vpop.f32.mrb[14].mxu1 }
 0x2ef   : >> { %v1369_v56 = vpop.f32.mrb[15].mxu1 }
 0x363   : >> { %v481_v57 = vpop.xlane.xlu1 %480 }
 0x364   : >> { %v482_v58 = vsub.f32 %v473_v37, %v481_v57 }
 0x366   : >> { %v483_v59 = vmul.f32 1.442695, %v482_v58 }
 0x368   : >> { %1489 = vpow2.f32 %v483_v59 }
 0x36b   : >> { %v593_v60 = vpop.xlane.xlu0 %592 }
 0x36c   : >> { %v594_v61 = vsub.f32 %v585_v42, %v593_v60 }
 0x36e   : >> { %v595_v62 = vmul.f32 1.442695, %v594_v61 }
 0x370   : >> { %1491 = vpow2.f32 %v595_v62 }
 0x372   : >> { %v1490_v63 = vpop.eup %1489 }
 0x373   : >> { %v709_v0 = vpop.xlane.xlu0 %708  ;;  %v485_v1 = vsel %vm432_vm2, %v1490_v63, 0.0 }
 0x374   : >> { %v710_v2 = vsub.f32 %v701_v47, %v709_v0  ;;  %486 = vadd.xlane.f32.xlu0 %v485_v1  ;;  %v1483_v1 = vld [vmem:[%s1755_s12] sm:$0xff]  }
 0x376   : >> { %v711_v3 = vmul.f32 1.442695, %v710_v2  ;;  %v1484_v2 = vld [vmem:[%s1755_s12 + $0x8] sm:$0xff]   ;;  %s1944_s12 = scalar_lea.vmem (%p334_p11), [#allocation3], %s1709_s23 }
 0x378   : >> { %1493 = vpow2.f32 %v711_v3  ;;  %v1485_v3 = vld [vmem:[%s1761_s19] sm:$0xff]  }
 0x37a   : >> { %v1492_v7 = vpop.eup %1491 }
 0x37b   : >> { %v597_v8 = vsel %vm432_vm2, %v1492_v7, 0.0  ;;  %v825_v11 = vpop.xlane.xlu1 %824 }
 0x37c   : >> { %598 = vadd.xlane.f32.xlu1 %v597_v8  ;;  %v826_v12 = vsub.f32 %v817_v52, %v825_v11 }
 0x37e   : >> { %v827_v13 = vmul.f32 1.442695, %v826_v12 }
 0x380   : >> { %1495 = vpow2.f32 %v827_v13 }
 0x382   : >> { %v1494_v9 = vpop.eup %1493 }
 0x383   : >> { %v713_v10 = vsel %vm432_vm2, %v1494_v9, 0.0 }
 0x384   : >> { %714 = vadd.xlane.f32.xlu0 %v713_v10 }
 0x38a   : >> { %v1496_v14 = vpop.eup %1495 }
 0x38b   : >> { %v829_v15 = vsel %vm432_vm2, %v1496_v14, 0.0 }
 0x38d   : >> { %603 = vrot.lane.b32.xlu1 %v1769_v22, %s1600_s10  ;;  %s369_s10 = scalar_lea.vmem %s1936_s7, %s1258_s25 }
 0x38e   : >> { %v1850_v8 = vld [vmem:[%s369_s10] sm:$0x7f]  ;;  %s1515_s10 = scalar_lea.vmem (%p334_p11), %s1514_s26, 256 }
 0x39a   : >> { %491 = vrot.lane.b32.xlu0 %v1769_v22, %s1601_s18 }
 0x39e   : >> { %835 = vrot.lane.b32.xlu0 %v1769_v22, %s1602_s22 }
 0x3b1   : >> { %830 = vadd.xlane.f32.xlu1 %v829_v15 }
 0x3c2   : >> { %719 = vrot.lane.b32.xlu1 %v1769_v22, %s1603_s0 }
 0x401   : >> { %v487_v18 = vpop.xlane.xlu0 %486 }
 0x402   : >> { %1497 = vrcp.f32 %v487_v18 }
 0x409   : >> { %v599_v19 = vpop.xlane.xlu1 %598 }
 0x40a   : >> { %1499 = vrcp.f32 %v599_v19 }
 0x40c   : >> { %v1498_v20 = vpop.eup %1497 }
 0x40d   : >> { %v489_v23 = vmul.f32 %v1498_v20, %v1490_v63  ;;  %v604_v26 = vpop.permute.xlu1 %603 }
 0x40e   : >> { %v609_v29 = vsel %vm496_vm3, %v604_v26, 0 }
 0x40f   : >> { %v490_v27 = vpack.c.bf16 %v489_v23, %v489_v23 }
 0x411   : >> { %v715_v21 = vpop.xlane.xlu0 %714 }
 0x412   : >> { %1501 = vrcp.f32 %v715_v21 }
 0x414   : >> { %v1500_v28 = vpop.eup %1499 }
 0x415   : >> { %v492_v24 = vpop.permute.xlu0 %491  ;;  %v601_v22 = vmul.f32 %v1500_v28, %v1492_v7  ;;  %v1486_v7 = vld [vmem:[%s1761_s19 + $0x8] sm:$0xff]  }
 0x416   : >> { %v498_v25 = vsel %vm496_vm3, %v492_v24, 0 }
 0x417   : >> { %1335 = vmatpush3.bf16.msra.mxu0 %v498_v25  ;;  %v602_v30 = vpack.c.bf16 %v601_v22, %v601_v22 }
 0x418   : >> { %1346 = vmatprep.subr.bf16.mxu0 %v1591_v17 }
 0x419   : >> { %v836_v36 = vpop.permute.xlu0 %835 }
 0x41a   : >> { %1337 = vmatmul.mubr.msk.bf16.vlgmr.msra.gmra.mrb[4].mxu0 %vm432_vm2, %v490_v27  ;;  %v841_v38 = vsel %vm496_vm3, %v836_v36, 0 }
 0x41b   : >> { %1347 = vmatpush3.bf16.msra.mxu0 %v609_v29  ;;  %1348 = vmatprep.mubr.msk.bf16.mxu0 %vm1592_vm0, %v1591_v17 }
 0x41c   : >> { %1358 = vmatprep.subr.bf16.mxu0 %v1591_v17  ;;  %v1502_v31 = vpop.eup %1501 }
 0x41d   : >> { %v717_v33 = vmul.f32 %v1502_v31, %v1494_v9  ;;  %v894_v9 = vrot.slane %v1850_v8, %v311_v5 }
 0x41f   : >> { %v718_v37 = vpack.c.bf16 %v717_v33, %v717_v33 }
 0x422   : >> { %1349 = vmatmul.mubr.msk.bf16.vlgmr.msra.gmra.mrb[8].mxu0 %vm432_vm2, %v602_v30 }
 0x423   : >> { %1360 = vmatprep.mubr.msk.bf16.mxu0 %vm1592_vm0, %v1591_v17 }
 0x43e   : >> { %v831_v32 = vpop.xlane.xlu1 %830 }
 0x43f   : >> { %1503 = vrcp.f32 %v831_v32 }
 0x442   : >> { %v720_v34 = vpop.permute.xlu1 %719 }
 0x443   : >> { %v725_v35 = vsel %vm496_vm3, %v720_v34, 0 }
 0x444   : >> { %1359 = vmatpush3.bf16.msra.mxu0 %v725_v35 }
 0x445   : >> { %1370 = vmatprep.subr.bf16.mxu0 %v1591_v17 }
 0x447   : >> { %1361 = vmatmul.mubr.msk.bf16.vlgmr.msra.gmra.mrb[12].mxu0 %vm432_vm2, %v718_v37 }
 0x448   : >> { %1371 = vmatpush3.bf16.msra.mxu0 %v841_v38  ;;  %1372 = vmatprep.mubr.msk.bf16.mxu0 %vm1592_vm0, %v1591_v17  ;;  %v982_v38 = vsub.s32 2, %v1711_v4 }
 0x449   : >> { %v1504_v39 = vpop.eup %1503  ;;  %1384 = vmatprep.subr.bf16.mxu0 %v1591_v17 }
 0x44a   : >> { %v833_v40 = vmul.f32 %v1504_v39, %v1496_v14 }
 0x44c   : >> { %v834_v41 = vpack.c.bf16 %v833_v40, %v833_v40  ;;  %v978_v40 = vrot.slane %v1850_v8, %v320_v6 }
 0x44f   : >> { %1373 = vmatmul.mubr.msk.bf16.vlgmr.msra.gmra.mrb[16].mxu0 %vm432_vm2, %v834_v41 }
 0x450   : >> { %1388 = vmatprep.mubr.msk.bf16.mxu0 %vm1592_vm0, %v1591_v17  ;;  %1385 = vmatpush3.bf16.msra.mxu0 %v1483_v1 }
 0x451   : >> { %1386 = vmatprep.subr.bf16.mxu0 %v1591_v17 }
 0x454   : >> { %1387 = vmatpush3.bf16.msra.mxu0 %v1484_v2 }
 0x4ed   : >> { %v534_v42 = vpop.f32.mrb[4].mxu0 }
 0x4ee   : >> { %540 = vst.msk [vmem:[#allocation2] sm:$0xff] %vm432_vm2, %v534_v42  ;;  %v1338_v43 = vpop.f32.mrb[5].mxu0 }
 0x4ef   : >> { %v537_v44 = vpop.f32.mrb[6].mxu0  ;;  %v983_v43 = vrot.slane %v1850_v8, %v982_v38 }
 0x4f0   : >> { %v1339_v45 = vpop.f32.mrb[7].mxu0 }
 0x4f5   : >> { %v645_v46 = vpop.f32.mrb[8].mxu0 }
 0x4f6   : >> { %652 = vrot.lane.b32.xlu1 %v645_v46, %s1604_s17  ;;  %v1350_v47 = vpop.f32.mrb[9].mxu0  ;;  %s1945_s17 = smov (%p334_p11), %s1944_s12 }
 0x4f7   : >> { %v648_v48 = vpop.f32.mrb[10].mxu0  ;;  %v1487_v47 = vld [vmem:[%s1761_s19 + $0x10] sm:$0xff]  }
 0x4f8   : >> { %v1351_v49 = vpop.f32.mrb[11].mxu0  ;;  %v1488_v48 = vld [vmem:[%s1761_s19 + $0x18] sm:$0xff]   ;;  %s1283_s19 = sshll.u32 (%p334_p11), %s1674_s9, 7 }
 0x4f9   : >> { %v988_v49 = vsub.s32 3, %v1711_v4  ;;  %s1889_s0 = scalar_lea.hbm (%p334_p11), %s1937_s8, %s1283_s19 }
 0x4fb   : >> { %v989_v50 = vrot.slane %v1850_v8, %v988_v49 }
 0x51a   : >> { %v761_v52 = vpop.f32.mrb[12].mxu0 }
 0x51b   : >> { %768 = vrot.lane.b32.xlu0 %v761_v52, %s1605_s20  ;;  %v1362_v53 = vpop.f32.mrb[13].mxu0  ;;  %s1170_s20 = sshll.u32 (%p334_p11), %s1945_s17, 4  ;;  %s1171_s20 = int_to_ptr.vmem [resolvable:$true] %s1170_s20 }
 0x51c   : >> { %v764_v54 = vpop.f32.mrb[14].mxu0  ;;  %s1509_s25 = scalar_lea.vmem (%p334_p11), %s1171_s20, 128  ;;  %p1516_p1 = scmp.lt.s32.totalorder (%p334_p11), %s1171_s20, %s1514_s26 }
 0x51d   : >> { %v1363_v55 = vpop.f32.mrb[15].mxu0  ;;  %p1510_p12 = scmp.ne.s32.totalorder (%p334_p11), %s1171_s20, %s1509_s25  ;;  %p1517_p2 = scmp.lt.s32.totalorder (%p334_p11), %s1515_s10, %s1509_s25 }
 0x51f   : > { %p1511_p13 = pnand (%p334_p11), %p1510_p12, %p1691_p5  ;;  %p1518_p3 = por (%p334_p11), %p1517_p2, %p1516_p1 }
 0x521   : > { %p1512_p0 = pneg (%p334_p11), %p1511_p13 }
 0x522   : >> { %v877_v56 = vpop.f32.mrb[16].mxu0 }
 0x523   : >> { %884 = vrot.lane.b32.xlu1 %v877_v56, %s1606_s21  ;;  %v1374_v57 = vpop.f32.mrb[17].mxu0  ;;  %s1946_s21 = sand.u32 (%p334_p11), 1, %s1571_s28   ;;  %p1519_p4 = pnand (%p334_p11), %p1518_p3, %p1512_p0 }
 0x524   : >> { %v880_v58 = vpop.f32.mrb[18].mxu0  ;;  %s1157_s13 = scalar_lea.sflag (%p334_p11), [#allocation4], %s1946_s21 }
 0x525   : >> { %v1375_v59 = vpop.f32.mrb[19].mxu0  ;;  %v1049_v58 = vsub.s32 4, %v1711_v4 }
 0x527   : >> { %v1050_v59 = vrot.slane %v1850_v8, %v1049_v58 }
 0x568   : >> { %v653_v60 = vpop.permute.xlu1 %652 }
 0x569   : >> { %656 = vst.msk [vmem:[#allocation2] sm:$0xff] %vm655_vm4, %v653_v60 }
 0x58d   : >> { %v769_v61 = vpop.permute.xlu0 %768 }
 0x58e   : >> { %772 = vst.msk [vmem:[#allocation2] sm:$0xff] %vm771_vm5, %v769_v61 }
 0x595   : >> { %v885_v62 = vpop.permute.xlu1 %884 }
 0x596   : >> { %888 = vst.msk [vmem:[#allocation2] sm:$0xff] %vm887_vm6, %v885_v62 }
 0x59d   : >> { %v889_v63 = vld [vmem:[#allocation2] sm:$0xff] }
 0x59e   : >> { %v890_v0 = vpack.c.bf16 %v889_v63, %v889_v63 }
 0x5a0   : >> { %1381 = vmatmul.mubr.msk.bf16.vlgmr.msra.gmra.mrb[16].mxu1 %vm384_vm1, %v890_v0 }
 0x5a1   : >> { %1400 = vmatprep.mubr.msk.bf16.mxu1 %vm1592_vm0, %v1591_v17  ;;  %1393 = vmatpush3.bf16.msra.mxu1 %v1485_v3 }
 0x5a2   : >> { %1394 = vmatprep.subr.bf16.mxu1 %v1591_v17 }
 0x5a5   : >> { %1395 = vmatpush3.bf16.msra.mxu1 %v1486_v7 }
 0x5a6   : >> { %1396 = vmatprep.subr.bf16.mxu1 %v1591_v17 }
 0x5a9   : >> { %1397 = vmatpush3.bf16.msra.mxu1 %v1487_v47 }
 0x5aa   : >> { %1398 = vmatprep.subr.bf16.mxu1 %v1591_v17 }
 0x5ad   : >> { %1399 = vmatpush3.bf16.msra.mxu1 %v1488_v48 }
 0x673   : >> { %v944_v10 = vpop.f32.mrb[16].mxu1 }
 0x674   : >> { %v945_v11 = vadd.f32 %v944_v10, %v894_v9  ;;  %v1382_v12 = vpop.f32.mrb[17].mxu1 }
 0x675   : >> { %v947_v13 = vpop.f32.mrb[18].mxu1 }
 0x676   : >> { %v950_v14 = vadd.f32 %v1583_v16, %v945_v11  ;;  %v1383_v15 = vpop.f32.mrb[19].mxu1 }
 0x678   : >> { %v951_v18 = vsel %vm384_vm1, %v950_v14, 0.0  ;;  %v959_v19 = vmul.f32 %v950_v14, %v950_v14 }
 0x679   : >> { %v952_v20 = vrot.slane %v951_v18, 4 }
 0x67a   : >> { %v960_v21 = vsel %vm384_vm1, %v959_v19, 0.0 }
 0x67b   : >> { %v953_v23 = vadd.f32 %v952_v20, %v951_v18  ;;  %v961_v24 = vrot.slane %v960_v21, 4 }
 0x67d   : >> { %v954_v25 = vrot.slane %v953_v23, 2  ;;  %v962_v26 = vadd.f32 %v961_v24, %v960_v21 }
 0x67f   : >> { %v955_v27 = vadd.f32 %v954_v25, %v953_v23  ;;  %v963_v28 = vrot.slane %v962_v26, 2 }
 0x681   : >> { %v956_v29 = vrot.slane %v955_v27, 1  ;;  %v964_v22 = vadd.f32 %v963_v28, %v962_v26 }
 0x683   : >> { %v957_v30 = vadd.f32 %v956_v29, %v955_v27  ;;  %v965_v31 = vrot.slane %v964_v22, 1  ;;  %v1146_v29 = vsub.s32 5, %v1711_v4 }
 0x685   : >> { %v958_v32 = vmul.f32 0.125, %v957_v30  ;;  %v966_v33 = vadd.f32 %v965_v31, %v964_v22  ;;  %v1151_v22 = vsub.s32 6, %v1711_v4  ;;  %v1147_v31 = vrot.slane %v1850_v8, %v1146_v29 }
 0x687   : >> { %v967_v16 = vmul.f32 0.125, %v966_v33  ;;  %v968_v34 = vmul.f32 %v958_v32, %v958_v32  ;;  %v971_v39 = vsub.f32 %v950_v14, %v958_v32 }
 0x689   : >> { %v969_v35 = vsub.f32 %v967_v16, %v968_v34  ;;  %v1152_v16 = vrot.slane %v1850_v8, %v1151_v22 }
 0x68b   : >> { %v970_v36 = vmax.f32 %v969_v35, 0.0 }
 0x68d   : >> { %v972_v37 = vadd.f32 1e-05, %v970_v36 }
 0x68f   : >> { %1505 = vrsqrt.f32 %v972_v37 }
 0x699   : >> { %v1506_v41 = vpop.eup %1505 }
 0x69a   : >> { %v974_v42 = vmul.f32 %v1506_v41, %v971_v39 }
 0x69c   : >> { %v979_v44 = vmul.f32 %v978_v40, %v974_v42 }
 0x69e   : >> { %v984_v45 = vadd.f32 %v983_v43, %v979_v44 }
 0x6a0   : >> { %v985_v46 = vpack.c.bf16 %v984_v45, %v984_v45 }
 0x6a2   : >> { %1389 = vmatmul.mubr.msk.bf16.vlgmr.msra.gmra.mrb[20].mxu0 %vm384_vm1, %v985_v46 }
 0x775   : >> { %v1039_v51 = vpop.f32.mrb[20].mxu0 }
 0x776   : >> { %v1040_v52 = vadd.f32 %v1039_v51, %v989_v50  ;;  %v1390_v53 = vpop.f32.mrb[21].mxu0 }
 0x777   : >> { %v1042_v54 = vpop.f32.mrb[22].mxu0 }
 0x778   : >> { %v1045_v55 = vmax.f32 %v1040_v52, 0.0  ;;  %v1391_v56 = vpop.f32.mrb[23].mxu0 }
 0x77a   : >> { %v1046_v57 = vpack.c.bf16 %v1045_v55, %v1045_v55 }
 0x77c   : >> { %1401 = vmatmul.mubr.msk.bf16.vlgmr.msra.gmra.mrb[20].mxu1 %vm1075_vm7, %v1046_v57 }
 0x84f   : >> { %v1113_v17 = vpop.f32.mrb[20].mxu1 }
 0x850   : >> { %v1114_v60 = vadd.f32 %v1113_v17, %v1050_v59  ;;  %v1402_v61 = vpop.f32.mrb[21].mxu1 }
 0x851   : >> { %v1116_v62 = vpop.f32.mrb[22].mxu1 }
 0x852   : >> { %v1119_v63 = vadd.f32 %v1114_v60, %v984_v45  ;;  %v1403_v0 = vpop.f32.mrb[23].mxu1 }
 0x854   : >> { %v1120_v1 = vsel %vm384_vm1, %v1119_v63, 0.0  ;;  %v1128_v2 = vmul.f32 %v1119_v63, %v1119_v63 }
 0x855   : >> { %v1121_v3 = vrot.slane %v1120_v1, 4 }
 0x856   : >> { %v1129_v7 = vsel %vm384_vm1, %v1128_v2, 0.0 }
 0x857   : >> { %v1122_v9 = vadd.f32 %v1121_v3, %v1120_v1  ;;  %v1130_v10 = vrot.slane %v1129_v7, 4 }
 0x859   : >> { %v1123_v11 = vrot.slane %v1122_v9, 2  ;;  %v1131_v12 = vadd.f32 %v1130_v10, %v1129_v7 }
 0x85b   : >> { %v1124_v13 = vadd.f32 %v1123_v11, %v1122_v9  ;;  %v1132_v14 = vrot.slane %v1131_v12, 2 }
 0x85d   : >> { %v1125_v15 = vrot.slane %v1124_v13, 1  ;;  %v1133_v18 = vadd.f32 %v1132_v14, %v1131_v12 }
 0x85f   : >> { %v1126_v19 = vadd.f32 %v1125_v15, %v1124_v13  ;;  %v1134_v20 = vrot.slane %v1133_v18, 1 }
 0x861   : >> { %v1127_v21 = vmul.f32 0.125, %v1126_v19  ;;  %v1135_v23 = vadd.f32 %v1134_v20, %v1133_v18 }
 0x863   : >> { %v1136_v24 = vmul.f32 0.125, %v1135_v23  ;;  %v1137_v25 = vmul.f32 %v1127_v21, %v1127_v21  ;;  %v1140_v30 = vsub.f32 %v1119_v63, %v1127_v21 }
 0x865   : >> { %v1138_v26 = vsub.f32 %v1136_v24, %v1137_v25 }
 0x867   : >> { %v1139_v27 = vmax.f32 %v1138_v26, 0.0 }
 0x869   : >> { %v1141_v28 = vadd.f32 1e-05, %v1139_v27 }
 0x86b   : >> { %1507 = vrsqrt.f32 %v1141_v28 }
 0x875   : >> { %v1508_v32 = vpop.eup %1507 }
 0x876   : >> { %v1143_v33 = vmul.f32 %v1508_v32, %v1140_v30  ;;  %336 = sbr.rel (!%p334_p11) target bundleno = 166 (0xa6), region = 99 }
 0x878   : >> { %v1148_v34 = vmul.f32 %v1147_v31, %v1143_v33 }
 0x87a   : >> { %v1153_v35 = vadd.f32 %v1152_v16, %v1148_v34  }
 0x87c   : >> { %v1943_v16 = vmov %v1153_v35  ;;  %1155 = vst.msk [vmem:[%s1944_s12] sm:$0xff] (%p334_p11), %vm384_vm1, %v1153_v35 }
 0x87d   : > { %1522 = shalt.err (!%p1519_p4)
}
 0x87e   : > { %s1523_s9 = scalar_lea.hbm %s1889_s0, 128  ;;  %s1527_s19 = scalar_lea.hbm %s1937_s8, 256 }
 0x87f   : > { %p1524_p7 = scmp.ne.s32.totalorder %s1889_s0, %s1523_s9  ;;  %p1528_p10 = scmp.lt.u32.totalorder %s1889_s0, %s1937_s8 }
 0x880   : > { %p1529_p11 = scmp.lt.u32.totalorder %s1527_s19, %s1523_s9  ;;  %p1531_p13 = scmp.lt.u32.totalorder %s1523_s9, %s1889_s0 }
 0x881   : > { %p1525_p8 = pnand %p1524_p7, %p1691_p5 }
 0x882   : > { %p1530_p12 = por %p1529_p11, %p1528_p10 }
 0x883   : > { %p1526_p9 = pneg %p1525_p8 }
 0x884   : > { %p1532_p0 = por %p1531_p13, %p1530_p12 }
 0x886   : > { %p1533_p1 = pnand %p1532_p0, %p1526_p9 }
 0x888   : > { %1536 = shalt.err (!%p1533_p1)
}
 0x889   : > { %1404 = dma.vmem_to_hbm [thread:$0]  (%p1691_p5), %s1171_s20, 128, %s1889_s0, %s1157_s13  }
 0x88a PF: > { %p1410_p2 = scmp.ge.s32.totalorder %s1579_s30, 2  ;;  %s1182_s17 = sand.u32 1, %s1567_s27  }
 0x88b   : > { %s1183_s21 = scalar_lea.sflag [#allocation4], %s1182_s17 }
 0x88c   : > { %p1407_p3 = pnand %p1410_p2, %p1695_p6 }
 0x88e   : > { %1562 = dma.done.wait (!%p1407_p3), %s1183_s21, 128  }
 0x88f   : > { %1564 = vsyncadd (!%p1407_p3), %s1183_s21, 4294967168  ;;  %p18_p4 = scmp.ge.s32.totalorder %s1678_s11, 4   ;;  %s1947_s27 = smov %s1571_s28 }
 0x890   : > { %s1948_s28 = smov %s1575_s29  ;;  %s1949_s29 = smov %s1689_s14 }
 0x891   : > { %s1950_s30 = smov %s1678_s11  ;;  %20 = sbr.rel (!%p18_p4) target bundleno = 5 (0x5), region = 110 }
 0x898   :  { %1188 = vsyncpa [#allocation4], 1 }
 0x899   :  { %1190 = vsyncpa [#allocation4 + $0x1], 1 }

</bundles_post_ra>
